<compile_context>
chip_gen: v5e
topology: v5e:2x2
jax: 0.10.0
libtpu: 0.0.40
codegen_flags: <defaults>
</compile_context>

<pallas_src>
import functools

import jax
import jax.numpy as jnp
from jax.experimental import pallas as pl
from jax.experimental.pallas import tpu as pltpu


def _round_up(x, m):
    return ((x + m - 1) // m) * m


def _critic_kernel(x_ref, w1_ref, b1_ref, w2_ref, b2_ref, w3_ref, out_ref):
    """One batch tile of the critic MLP, feature-major (batch on lanes).

    x_ref  : (D,  tb)  bf16/f32   packed [state; action]^T tile
    w1_ref : (H1, D)   bf16/f32   b1_ref : (H1, 1) f32
    w2_ref : (H2, H1)  bf16/f32   b2_ref : (H2, 1) f32
    w3_ref : (1,  H2)  bf16/f32
    out_ref: (1,  tb)  f32        lane-dense row of q values for this tile
    """
    # Layer 1: single MXU dot (concat already packed along the contracting dim),
    # f32 accumulation; bias broadcast along lanes + ReLU in f32.
    h1 = jnp.dot(w1_ref[...], x_ref[...], preferred_element_type=jnp.float32)
    h1 = jnp.maximum(h1 + b1_ref[...], 0.0)                     # (H1, tb) f32

    # Layer 2 (+ ReLU).
    h2 = jnp.dot(w2_ref[...], h1.astype(w2_ref.dtype),
                 preferred_element_type=jnp.float32)
    h2 = jnp.maximum(h2 + b2_ref[...], 0.0)                     # (H2, tb) f32

    # Layer 3 (out_features == 1): (1, H2) @ (H2, tb) on the MXU lands directly
    # as the lane-dense (1, tb) output row — no sublane->lane shuffle.
    q = jnp.dot(w3_ref[...], h2.astype(w3_ref.dtype),
                preferred_element_type=jnp.float32)             # (1, tb) f32
    out_ref[...] = q


def prepare_critic_params(params, *, use_bf16=True):
    """One-time weight prep, hoisted out of the per-call hot path.

    Transposes weights to feature-major, casts matmul operands to bf16 and
    reshapes biases to (H, 1) columns (broadcast along lanes in the kernel).
    """
    w1, b1, w2, b2, w3, b3 = params
    mm_dtype = jnp.bfloat16 if use_bf16 else jnp.float32
    H1 = w1.shape[1]
    H2 = w2.shape[1]
    w1T = jnp.asarray(w1.T, mm_dtype)                    # (H1, S+A)
    b1c = jnp.asarray(b1, jnp.float32).reshape(H1, 1)    # (H1, 1)
    w2T = jnp.asarray(w2.T, mm_dtype)                    # (H2, H1)
    b2c = jnp.asarray(b2, jnp.float32).reshape(H2, 1)    # (H2, 1)
    w3r = jnp.asarray(w3, mm_dtype).reshape(1, H2)       # (H2, 1) -> (1, H2)
    b3f = jnp.asarray(b3, jnp.float32).reshape(1)
    return (w1T, b1c, w2T, b2c, w3r, b3f)


@jax.jit
def critic_forward(state, action, prep):
    """JAX wrapper: one fused concat/cast/pad/transpose copy + Pallas kernel."""
    w1T, b1c, w2T, b2c, w3r, b3 = prep
    B, S = state.shape
    A = action.shape[1]
    H1, D = w1T.shape
    H2 = w2T.shape[0]
    assert D == S + A, (D, S, A)
    mm_dtype = w1T.dtype

    # Batch tiling: batch is on the lane axis, so tiles are multiples of 128.
    # B > 128 always splits into >= 2 tiles so v7x's two TensorCores both get
    # work under "parallel" semantics; cap raised to 4096 (VMEM not binding).
    if B <= 128:
        tb = 128
        num_tiles = 1
    else:
        tb = min(4096, _round_up(pl.cdiv(B, 2), 128))
        num_tiles = pl.cdiv(B, tb)
    b_pad = num_tiles * tb

    # Packed feature-major input (D, b_pad): XLA fuses concat + cast + pad +
    # transpose into one copy; padded batch columns are zero-filled.
    sa = jnp.concatenate([state, action], axis=1).astype(mm_dtype)   # (B, D)
    if b_pad != B:
        sa = jnp.pad(sa, ((0, b_pad - B), (0, 0)))
    xT = sa.T                                                         # (D, b_pad)

    out_row = pl.pallas_call(
        _critic_kernel,
        out_shape=jax.ShapeDtypeStruct((1, b_pad), jnp.float32),
        grid_spec=pltpu.PrefetchScalarGridSpec(
            num_scalar_prefetch=0,
            grid=(num_tiles,),
            in_specs=[
                pl.BlockSpec((D, tb), lambda i: (0, i)),      # packed input tile
                pl.BlockSpec((H1, D), lambda i: (0, 0)),      # W1^T
                pl.BlockSpec((H1, 1), lambda i: (0, 0)),      # b1 (column)
                pl.BlockSpec((H2, H1), lambda i: (0, 0)),     # W2^T
                pl.BlockSpec((H2, 1), lambda i: (0, 0)),      # b2 (column)
                pl.BlockSpec((1, H2), lambda i: (0, 0)),      # W3^T (row)
            ],
            out_specs=pl.BlockSpec((1, tb), lambda i: (0, i)),  # lane-dense row
        ),
        compiler_params=pltpu.CompilerParams(
            dimension_semantics=("parallel",)),
    )(xT, w1T, b1c, w2T, b2c, w3r)

    # Lane-dense slab -> (B, 1); scalar bias b3 added outside the kernel.
    q = out_row[0, :B].reshape(B, 1) + b3.reshape(1, 1)
    return q


def init_critic_params(key, state_dim, action_dim, critic_hidden):
    """Deterministic init mimicking PyTorch nn.Linear default (U[-1/sqrt(fan_in), ..])."""
    d_in = state_dim + action_dim
    h1, h2 = critic_hidden
    ks = jax.random.split(key, 6)

    def lin(kw, kb, fan_in, fan_out):
        bound = 1.0 / jnp.sqrt(jnp.asarray(fan_in, jnp.float32))
        # stored as (in, out): x @ W + b
        w = jax.random.uniform(kw, (fan_in, fan_out), jnp.float32, -bound, bound)
        b = jax.random.uniform(kb, (fan_out,), jnp.float32, -bound, bound)
        return w, b

    w1, b1 = lin(ks[0], ks[1], d_in, h1)
    w2, b2 = lin(ks[2], ks[3], h1, h2)
    w3, b3 = lin(ks[4], ks[5], h2, 1)
    return (w1, b1, w2, b2, w3, b3)


def critic_ref(state, action, params, *, use_bf16=True):
    """Pure-JAX reference with the same bf16 matmul / f32 accumulate recipe."""
    w1, b1, w2, b2, w3, b3 = params
    dt = jnp.bfloat16 if use_bf16 else jnp.float32
    sa = jnp.concatenate([state, action], axis=1).astype(dt)
    h1 = jnp.maximum(
        jnp.dot(sa, w1.astype(dt), preferred_element_type=jnp.float32) + b1, 0.0)
    h2 = jnp.maximum(
        jnp.dot(h1.astype(dt), w2.astype(dt),
                preferred_element_type=jnp.float32) + b2, 0.0)
    q = jnp.dot(h2.astype(dt), w3.astype(dt),
                preferred_element_type=jnp.float32) + b3
    return q


if __name__ == "__main__":
    # Small shapes implied by the module's forward.
    batch = 8
    state_dim = 16
    action_dim = 8
    critic_hidden = (32, 32)

    root = jax.random.PRNGKey(0)
    k_state, k_action, k_params = jax.random.split(root, 3)

    state = jax.random.normal(k_state, (batch, state_dim), jnp.float32)
    action = jax.random.normal(k_action, (batch, action_dim), jnp.float32)
    params = init_critic_params(k_params, state_dim, action_dim, critic_hidden)

    prep = prepare_critic_params(params)            # one-time weight prep (hoisted)
    q = critic_forward(state, action, prep)
    jax.block_until_ready(q)

    q_ref = critic_ref(state, action, params)
    assert q.shape == (batch, 1), q.shape
    assert jnp.allclose(q, q_ref, atol=1e-3, rtol=1e-3), (q, q_ref)

    print("KERNEL_OK")
</pallas_src>

<mosaic_0001>
module attributes {stable_mosaic.version = 11 : i64} {
  func.func @_critic_kernel(%arg0: i32, %arg1: memref<24x128xbf16, #tpu.memory_space<vmem>>, %arg2: memref<32x24xbf16, #tpu.memory_space<vmem>>, %arg3: memref<32x1xf32, #tpu.memory_space<vmem>>, %arg4: memref<32x32xbf16, #tpu.memory_space<vmem>>, %arg5: memref<32x1xf32, #tpu.memory_space<vmem>>, %arg6: memref<1x32xbf16, #tpu.memory_space<vmem>>, %arg7: memref<1x128xf32, #tpu.memory_space<vmem>>) attributes {dimension_semantics = [#tpu.dimension_semantics<parallel>], iteration_bounds = array<i64: 1>, scalar_prefetch = 0 : i64, scratch_operands = 0 : i64, tpu.core_type = #tpu.core_type<tc>, window_params = [{transform_indices = @transform_0, window_bounds = array<i64: 24, 128>}, {pipeline_mode = #tpu.pipeline_mode<synchronous>, transform_indices = @transform_1, window_bounds = array<i64: 32, 24>}, {pipeline_mode = #tpu.pipeline_mode<synchronous>, transform_indices = @transform_2, window_bounds = array<i64: 32, 1>}, {pipeline_mode = #tpu.pipeline_mode<synchronous>, transform_indices = @transform_3, window_bounds = array<i64: 32, 32>}, {pipeline_mode = #tpu.pipeline_mode<synchronous>, transform_indices = @transform_4, window_bounds = array<i64: 32, 1>}, {pipeline_mode = #tpu.pipeline_mode<synchronous>, transform_indices = @transform_5, window_bounds = array<i64: 1, 32>}, {transform_indices = @transform_6, window_bounds = array<i64: 1, 128>}]} {
    %c0 = arith.constant 0 : index
    %c0_0 = arith.constant 0 : index
    %0 = vector.load %arg2[%c0, %c0_0] : memref<32x24xbf16, #tpu.memory_space<vmem>>, vector<32x24xbf16>
    %c0_1 = arith.constant 0 : index
    %c0_2 = arith.constant 0 : index
    %1 = vector.load %arg1[%c0_1, %c0_2] : memref<24x128xbf16, #tpu.memory_space<vmem>>, vector<24x128xbf16>
    %cst = arith.constant dense<0.000000e+00> : vector<32x128xf32>
    %2 = tpu.matmul %0, %1, %cst {dimension_numbers = #tpu.dot_dimension_numbers<[1], [0], [0], [1], [0, 0, 1, 1], [], []>} : vector<32x24xbf16>, vector<24x128xbf16>, vector<32x128xf32> -> vector<32x128xf32>
    %c0_3 = arith.constant 0 : index
    %c0_4 = arith.constant 0 : index
    %3 = vector.load %arg3[%c0_3, %c0_4] : memref<32x1xf32, #tpu.memory_space<vmem>>, vector<32x1xf32>
    %4 = vector.broadcast %3 : vector<32x1xf32> to vector<32x128xf32>
    %5 = arith.addf %2, %4 : vector<32x128xf32>
    %cst_5 = arith.constant 0.000000e+00 : f32
    %6 = vector.broadcast %cst_5 : f32 to vector<32x128xf32>
    %7 = arith.maximumf %5, %6 : vector<32x128xf32>
    %c0_6 = arith.constant 0 : index
    %c0_7 = arith.constant 0 : index
    %8 = vector.load %arg4[%c0_6, %c0_7] : memref<32x32xbf16, #tpu.memory_space<vmem>>, vector<32x32xbf16>
    %9 = arith.truncf %7 : vector<32x128xf32> to vector<32x128xbf16>
    %cst_8 = arith.constant dense<0.000000e+00> : vector<32x128xf32>
    %10 = tpu.matmul %8, %9, %cst_8 {dimension_numbers = #tpu.dot_dimension_numbers<[1], [0], [0], [1], [0, 0, 1, 1], [], []>} : vector<32x32xbf16>, vector<32x128xbf16>, vector<32x128xf32> -> vector<32x128xf32>
    %c0_9 = arith.constant 0 : index
    %c0_10 = arith.constant 0 : index
    %11 = vector.load %arg5[%c0_9, %c0_10] : memref<32x1xf32, #tpu.memory_space<vmem>>, vector<32x1xf32>
    %12 = vector.broadcast %11 : vector<32x1xf32> to vector<32x128xf32>
    %13 = arith.addf %10, %12 : vector<32x128xf32>
    %cst_11 = arith.constant 0.000000e+00 : f32
    %14 = vector.broadcast %cst_11 : f32 to vector<32x128xf32>
    %15 = arith.maximumf %13, %14 : vector<32x128xf32>
    %c0_12 = arith.constant 0 : index
    %c0_13 = arith.constant 0 : index
    %16 = vector.load %arg6[%c0_12, %c0_13] : memref<1x32xbf16, #tpu.memory_space<vmem>>, vector<1x32xbf16>
    %17 = arith.truncf %15 : vector<32x128xf32> to vector<32x128xbf16>
    %cst_14 = arith.constant dense<0.000000e+00> : vector<1x128xf32>
    %18 = tpu.matmul %16, %17, %cst_14 {dimension_numbers = #tpu.dot_dimension_numbers<[1], [0], [0], [1], [0, 0, 1, 1], [], []>} : vector<1x32xbf16>, vector<32x128xbf16>, vector<1x128xf32> -> vector<1x128xf32>
    %c0_15 = arith.constant 0 : index
    %c0_16 = arith.constant 0 : index
    %19 = vector.load %arg7[%c0_15, %c0_16] : memref<1x128xf32, #tpu.memory_space<vmem>>, vector<1x128xf32>
    tpu.vector_store %arg7[%c0_15, %c0_16], %18 {strides = array<i32>} : memref<1x128xf32, #tpu.memory_space<vmem>>, vector<1x128xf32>,
    return
  }
  func.func @transform_0(%arg0: i32) -> (i32, i32) {
    %c0_i32 = arith.constant 0 : i32
    %c0_i32_0 = arith.constant 0 : i32
    return %c0_i32, %arg0 : i32, i32
  }
  func.func @transform_1(%arg0: i32) -> (i32, i32) {
    %c0_i32 = arith.constant 0 : i32
    %c0_i32_0 = arith.constant 0 : i32
    %c0_i32_1 = arith.constant 0 : i32
    return %c0_i32, %c0_i32_0 : i32, i32
  }
  func.func @transform_2(%arg0: i32) -> (i32, i32) {
    %c0_i32 = arith.constant 0 : i32
    %c0_i32_0 = arith.constant 0 : i32
    %c0_i32_1 = arith.constant 0 : i32
    return %c0_i32, %c0_i32_0 : i32, i32
  }
  func.func @transform_3(%arg0: i32) -> (i32, i32) {
    %c0_i32 = arith.constant 0 : i32
    %c0_i32_0 = arith.constant 0 : i32
    %c0_i32_1 = arith.constant 0 : i32
    return %c0_i32, %c0_i32_0 : i32, i32
  }
  func.func @transform_4(%arg0: i32) -> (i32, i32) {
    %c0_i32 = arith.constant 0 : i32
    %c0_i32_0 = arith.constant 0 : i32
    %c0_i32_1 = arith.constant 0 : i32
    return %c0_i32, %c0_i32_0 : i32, i32
  }
  func.func @transform_5(%arg0: i32) -> (i32, i32) {
    %c0_i32 = arith.constant 0 : i32
    %c0_i32_0 = arith.constant 0 : i32
    %c0_i32_1 = arith.constant 0 : i32
    return %c0_i32, %c0_i32_0 : i32, i32
  }
  func.func @transform_6(%arg0: i32) -> (i32, i32) {
    %c0_i32 = arith.constant 0 : i32
    %c0_i32_0 = arith.constant 0 : i32
    return %c0_i32, %arg0 : i32, i32
  }
}

</mosaic_0001>

<bundles_post_ra>
// kernel: critic_forward.1
= control target key start
LH: loop header
LB: loop body
LE: loop exit
PB: predicated region body
PF: predicated region fallthrough
CT: control target
= control target key end

     0   :  { %v238_v1 = vmov 0   ;;  %vm81_vm0 = vcmask 1043456   ;;  %vm74_vm1 = vcmask 195584   ;;  %vm148_vm2 = vcmask 261120   ;;  %s325_s0 = inlined_call_operand.vmem [shape: bf16[24,128], index: 0, kind: input, shape index: {}]   ;;  %s326_s2 = inlined_call_operand.vmem [shape: f32[32,1], index: 2, kind: input, shape index: {}]   ;;  %s327_s1 = inlined_call_operand.vmem [shape: bf16[32,24], index: 1, kind: input, shape index: {}]   ;;  %s328_s4 = inlined_call_operand.vmem [shape: f32[32,1], index: 4, kind: input, shape index: {}]   ;;  %s329_s3 = inlined_call_operand.vmem [shape: bf16[32,32], index: 3, kind: input, shape index: {}]   ;;  %s330_s5 = inlined_call_operand.vmem [shape: bf16[1,32], index: 5, kind: input, shape index: {}]   ;;  %s331_s6 = inlined_call_operand.vmem [shape: f32[1,128], index: 6, kind: output, shape index: {}]  }
   0x1   :  { %v30_v0 = vld [vmem:[%s325_s0 + $0x8] sm:$0xf]  ;;  %235 = vset.pattern.permute.xlu0 %v238_v1  ;;  %236 = vset.pattern.permute.xlu1 %v238_v1  ;;  %v33_v3 = vld [vmem:[%s326_s2 + $0x10] sm:$0xff]  ;;  %v31_v4 = vld [vmem:[%s326_s2] sm:$0xff] }
   0x2   :  { %v70_v2 = vunpack.c.l.b16 %v30_v0  ;;  %237 = vset.pattern.permute.xlu2 %v238_v1  ;;  %47 = vperm.xlu0 %235, %v33_v3   ;;  %v229_v7 = vld [vmem:[%s325_s0] sm:$0xff]  ;;  %v34_v8 = vld [vmem:[%s326_s2 + $0x18] sm:$0xff]  ;;  %v32_v9 = vld [vmem:[%s326_s2 + $0x8] sm:$0xff] }
   0x3   :  { %37 = vperm.xlu1 %236, %v31_v4   ;;  %v228_v10 = vld [vmem:[%s327_s1 + $0x8] sm:$0xff]  ;;  %v227_v11 = vld [vmem:[%s327_s1] sm:$0xff]  ;;  %v116_v19 = vld [vmem:[%s328_s4 + $0x10] sm:$0xff] }
   0x4   :  { %v72_v5 = vpack.c.b16 %v70_v2, %v70_v2  ;;  %v114_v12 = vld [vmem:[%s328_s4] sm:$0xff]  ;;  %v115_v13 = vld [vmem:[%s328_s4 + $0x8] sm:$0xff]  ;;  %130 = vperm.xlu2 %237, %v116_v19   ;;  %v117_v29 = vld [vmem:[%s328_s4 + $0x18] sm:$0xff] }
   0x5   :  { %v230_v34 = vld [vmem:[%s329_s3] sm:$0xff]  ;;  %v231_v35 = vld [vmem:[%s329_s3 + $0x8] sm:$0xff] }
   0x6   :  { %v83_v6 = vsel %vm81_vm0, %v72_v5, 0  ;;  %v178_v54 = vld [vmem:[%s330_s5] sm:$0x1] }
   0x7   :  { %232 = vmatpush.bf16.msra.mxu3 %v83_v6  ;;  %91 = vmatpush.bf16.msra.mxu0 %v83_v6 }
   0xa   :  { %52 = vperm.xlu0 %235, %v34_v8  }
   0xb   :  { %233 = vmatpush.bf16.msra.mxu3 %v229_v7  ;;  %92 = vmatpush.bf16.msra.mxu0 %v229_v7 }
   0xc   :  { %42 = vperm.xlu1 %236, %v32_v9   ;;  %135 = vperm.xlu2 %237, %v117_v29  }
   0xe   :  { %215 = vmatmul.msk.bf16.vlgmr.msra.gmra.mxu3 %vm74_vm1, %v228_v10  ;;  %214 = vmatmul.msk.bf16.vlgmr.msra.gmra.mxu0 %vm74_vm1, %v227_v11 }
  0x12   :  { %120 = vperm.xlu0 %235, %v114_v12  }
  0x14   :  { %125 = vperm.xlu1 %236, %v115_v13  }
  0x5e   :  { %v131_v38 = vpop.permute.xlu2 %130 }
  0x66   :  { %v136_v42 = vpop.permute.xlu2 %135 }
  0x74   :  { %v48_v15 = vpop.permute.xlu0 %47 }
  0x75   :  { %v38_v16 = vpop.permute.xlu1 %37 }
  0x7c   :  { %v53_v20 = vpop.permute.xlu0 %52 }
  0x7e   :  { %v43_v22 = vpop.permute.xlu1 %42 }
  0x84   :  { %v121_v46 = vpop.permute.xlu0 %120 }
  0x86   :  { %v126_v40 = vpop.permute.xlu1 %125 }
  0x8b   :  { %v94_v14 = vpop.f32.mrf.mxu0 }
  0x8c   :  { %v95_v24 = vadd.f32 %v94_v14, %v38_v16 }
  0x8e   :  { %v104_v30 = vmax.f32 %v95_v24, 0.0 }
  0x91   :  { %v99_v17 = vpop.f32.mrf.mxu3 }
  0x92   :  { %v100_v21 = vadd.f32 %v99_v17, %v48_v15 }
  0x93   :  { %v96_v18 = vpop.f32.mrf.mxu0 }
  0x94   :  { %v97_v25 = vadd.f32 %v96_v18, %v43_v22  ;;  %v106_v27 = vmax.f32 %v100_v21, 0.0 }
  0x96   :  { %v105_v31 = vmax.f32 %v97_v25, 0.0 }
  0x98   :  { %v112_v33 = vpack.c.bf16 %v105_v31, %v104_v30 }
  0x99   :  { %v101_v23 = vpop.f32.mrf.mxu3 }
  0x9a   :  { %v102_v26 = vadd.f32 %v101_v23, %v53_v20 }
  0x9c   :  { %v107_v28 = vmax.f32 %v102_v26, 0.0 }
  0x9e   :  { %v113_v32 = vpack.c.bf16 %v107_v28, %v106_v27 }
  0xa0   :  { %161 = vmatpush.bf16.msra.mxu1 %v113_v32 }
  0xa4   :  { %162 = vmatpush.bf16.msra.mxu1 %v112_v33 }
  0xa7   :  { %224 = vmatmul.msk.bf16.vlgmr.msra.gmra.mxu1 %vm148_vm2, %v230_v34 }
  0xb7   :  { %225 = vmatmul.msk.bf16.gmra.mxu1 %vm148_vm2, %v231_v35 }
 0x124   :  { %v164_v36 = vpop.f32.mrf.mxu1 }
 0x125   :  { %v165_v47 = vadd.f32 %v164_v36, %v121_v46 }
 0x127   :  { %v174_v52 = vmax.f32 %v165_v47, 0.0 }
 0x12c   :  { %v166_v37 = vpop.f32.mrf.mxu1 }
 0x12d   :  { %v167_v44 = vadd.f32 %v166_v37, %v126_v40 }
 0x12f   :  { %v175_v50 = vmax.f32 %v167_v44, 0.0 }
 0x131   :  { %v179_v53 = vpack.c.bf16 %v175_v50, %v174_v52 }
 0x134   :  { %v169_v39 = vpop.f32.mrf.mxu1 }
 0x135   :  { %v170_v41 = vadd.f32 %v169_v39, %v131_v38 }
 0x137   :  { %v176_v48 = vmax.f32 %v170_v41, 0.0 }
 0x13c   :  { %v171_v43 = vpop.f32.mrf.mxu1 }
 0x13d   :  { %v172_v45 = vadd.f32 %v171_v43, %v136_v42 }
 0x13f   :  { %v177_v49 = vmax.f32 %v172_v45, 0.0 }
 0x141   :  { %v180_v51 = vpack.c.bf16 %v177_v49, %v176_v48 }
 0x143   :  { %190 = vmatpush.bf16.msra.mxu2 %v180_v51 }
 0x147   :  { %191 = vmatpush.bf16.msra.mxu2 %v179_v53 }
 0x14a   :  { %226 = vmatmul.msk.bf16.vlgmr.msra.gmra.mxu2 %vm148_vm2, %v178_v54 }
 0x1cd   :  { %v193_v55 = vpop.f32.mrf.mxu2 }
 0x1ce   :  { %197 = vst [vmem:[%s331_s6] sm:$0x1] %v193_v55 }
 0x1d5   :  { %v195_v56 = vpop.f32.mrf.mxu2 }

</bundles_post_ra>
